<compile_context>
chip_gen: v7x
topology: tpu7x:2x2x1
jax: 0.10.0
libtpu: 0.0.40
codegen_flags: <defaults>
</compile_context>

<pallas_src>
import jax
import jax.numpy as jnp
from jax.experimental import pallas as pl
from jax.experimental.pallas import tpu as pltpu


def _round_up(x, m):
    return (x + m - 1) // m * m


def mlp_kernel(x_ref, w1_ref, b1_ref, w2_ref, b2_ref, w3_ref, b3_ref, o_ref):
    # x arrives f32; down-cast once in VMEM (avoids a separate XLA cast/pad pass
    # over x in HBM).  Matmuls: bf16 MXU inputs, f32 accumulation.
    x_bf = x_ref[...].astype(jnp.bfloat16)

    h1 = jnp.dot(x_bf, w1_ref[...], preferred_element_type=jnp.float32)
    h1 = jnp.maximum(h1 + b1_ref[...], 0.0)

    h2 = jnp.dot(h1.astype(jnp.bfloat16), w2_ref[...],
                 preferred_element_type=jnp.float32)
    h2 = jnp.maximum(h2 + b2_ref[...], 0.0)

    y = jnp.dot(h2.astype(jnp.bfloat16), w3_ref[...],
                preferred_element_type=jnp.float32)
    o_ref[...] = jax.nn.sigmoid(y + b3_ref[...]).astype(o_ref.dtype)


def prepare_params(params):
    """One-time weight prep: bf16 MXU weights, f32 (1, h) biases, hidden_2
    zero-padded up to a multiple of 128 (zero cols in w2/b2, zero rows in w3 --
    numerically identical since ReLU(0) = 0, but lane-dense intermediates and
    full MXU K for fc3)."""
    w1, b1, w2, b2, w3, b3 = params
    b1 = b1.reshape(1, -1)
    b2 = b2.reshape(1, -1)
    b3 = b3.reshape(1, -1)

    hidden_2 = w2.shape[1]
    h2p = _round_up(hidden_2, 128)
    if h2p != hidden_2:
        pad = h2p - hidden_2
        w2 = jnp.pad(w2, ((0, 0), (0, pad)))
        b2 = jnp.pad(b2, ((0, 0), (0, pad)))
        w3 = jnp.pad(w3, ((0, pad), (0, 0)))

    return (w1.astype(jnp.bfloat16), b1.astype(jnp.float32),
            w2.astype(jnp.bfloat16), b2.astype(jnp.float32),
            w3.astype(jnp.bfloat16), b3.astype(jnp.float32))


def baseline_net_forward(x, prepared_params, *, tile_b=512, out_dtype=jnp.bfloat16):
    """x: any shape whose trailing dims flatten to dataSize.
    Returns (batch, dataSize) in out_dtype (bf16 by default; upcast outside only
    if the consumer truly needs f32)."""
    w1, b1, w2, b2, w3, b3 = prepared_params
    data_size, hidden_1 = w1.shape
    h2p = w2.shape[1]

    x2d = x.reshape(-1, data_size)          # same as torch x.view(-1, dataSize)
    batch = x2d.shape[0]

    # Batch tile: multiple of 16 (bf16 output sublane packing, covers f32's 8),
    # capped so there are >= 2 grid steps (v7x: two TensorCores share the
    # "parallel" batch axis).  Tiny batches collapse to a single full-extent block.
    tile_b = min(tile_b, _round_up(pl.cdiv(batch, 2), 16))
    tile_b = max(tile_b, 16)
    if tile_b >= batch:
        tile_b = batch                      # single full-extent block
    grid = (pl.cdiv(batch, tile_b),)        # ragged tail masked by Pallas

    def resident(shape):
        # Same block index every grid step -> stays resident in VMEM, no re-DMA.
        return pl.BlockSpec(shape, lambda i: (0, 0))

    out = pl.pallas_call(
        mlp_kernel,
        out_shape=jax.ShapeDtypeStruct((batch, data_size), out_dtype),
        grid_spec=pltpu.PrefetchScalarGridSpec(
            num_scalar_prefetch=0,
            grid=grid,
            in_specs=[
                pl.BlockSpec((tile_b, data_size), lambda i: (i, 0)),  # x tile (f32)
                resident((data_size, hidden_1)),                      # w1 (bf16)
                resident((1, hidden_1)),                              # b1 (f32)
                resident((hidden_1, h2p)),                            # w2 (bf16, padded)
                resident((1, h2p)),                                   # b2 (f32, padded)
                resident((h2p, data_size)),                           # w3 (bf16, padded)
                resident((1, data_size)),                             # b3 (f32)
            ],
            out_specs=pl.BlockSpec((tile_b, data_size), lambda i: (i, 0)),
        ),
        compiler_params=pltpu.CompilerParams(
            dimension_semantics=("parallel",),     # shard batch axis on v7x
            vmem_limit_bytes=48 * 1024 * 1024,     # headroom for tile_b<=1024; fits v7x 64 MiB
        ),
    )(x2d, w1, b1, w2, b2, w3, b3)

    return out


def baseline_net_reference(x, params):
    """Pure-JAX f32 reference matching the PyTorch forward."""
    w1, b1, w2, b2, w3, b3 = params
    x2d = x.reshape(-1, w1.shape[0]).astype(jnp.float32)
    h = jnp.maximum(x2d @ w1 + b1, 0.0)
    h = jnp.maximum(h @ w2 + b2, 0.0)
    return jax.nn.sigmoid(h @ w3 + b3)


def init_params(key, data_size, hidden_1, hidden_2):
    """Deterministic init mimicking nn.Linear's uniform(-1/sqrt(fan_in), 1/sqrt(fan_in)).
    Weights stored (in_features, out_features) so the kernel computes x @ W + b."""
    ks = jax.random.split(key, 6)

    def linear(kw, kb, fan_in, fan_out):
        bound = 1.0 / jnp.sqrt(fan_in)
        w = jax.random.uniform(kw, (fan_in, fan_out), jnp.float32, -bound, bound)
        b = jax.random.uniform(kb, (1, fan_out), jnp.float32, -bound, bound)
        return w, b

    w1, b1 = linear(ks[0], ks[1], data_size, hidden_1)
    w2, b2 = linear(ks[2], ks[3], hidden_1, hidden_2)
    w3, b3 = linear(ks[4], ks[5], hidden_2, data_size)
    return (w1, b1, w2, b2, w3, b3)


if __name__ == "__main__":
    # NCHW-like input (2, 4, 16, 16) -> dataSize = 4*16*16 = 1024
    batch, C, H, W = 2, 4, 16, 16
    data_size = C * H * W
    hidden_1, hidden_2 = 128, 64

    key = jax.random.PRNGKey(0)
    kx, kp = jax.random.split(key)
    x = jax.random.normal(kx, (batch, C, H, W), dtype=jnp.float32)
    params = init_params(kp, data_size, hidden_1, hidden_2)
    prepared = prepare_params(params)   # one-time bf16 convert + hidden_2 pad

    y = baseline_net_forward(x, prepared)
    jax.block_until_ready(y)

    # correctness vs pure-JAX f32 reference (loose tol: bf16 MXU inputs + bf16 output)
    y_ref = baseline_net_reference(x, params)
    y_f32 = y.astype(jnp.float32)
    assert y.shape == (batch, data_size)
    assert y.dtype == jnp.bfloat16
    assert bool(jnp.all(jnp.isfinite(y_f32)))
    assert bool(jnp.all((y_f32 >= 0.0) & (y_f32 <= 1.0)))
    err = float(jnp.max(jnp.abs(y_f32 - y_ref)))
    assert err < 3e-2, err
    print("KERNEL_OK")
</pallas_src>

<mosaic_0001>
module attributes {stable_mosaic.version = 11 : i64} {
  func.func @mlp_kernel(%arg0: i32, %arg1: memref<2x1024xf32, #tpu.memory_space<vmem>>, %arg2: memref<1024x128xbf16, #tpu.memory_space<vmem>>, %arg3: memref<1x128xf32, #tpu.memory_space<vmem>>, %arg4: memref<128x128xbf16, #tpu.memory_space<vmem>>, %arg5: memref<1x128xf32, #tpu.memory_space<vmem>>, %arg6: memref<128x1024xbf16, #tpu.memory_space<vmem>>, %arg7: memref<1x1024xf32, #tpu.memory_space<vmem>>, %arg8: memref<2x1024xbf16, #tpu.memory_space<vmem>>) attributes {dimension_semantics = [#tpu.dimension_semantics<parallel>], iteration_bounds = array<i64: 1>, scalar_prefetch = 0 : i64, scratch_operands = 0 : i64, tpu.core_type = #tpu.core_type<tc>, window_params = [{transform_indices = @transform_0, window_bounds = array<i64: 2, 1024>}, {pipeline_mode = #tpu.pipeline_mode<synchronous>, transform_indices = @transform_1, window_bounds = array<i64: 1024, 128>}, {pipeline_mode = #tpu.pipeline_mode<synchronous>, transform_indices = @transform_2, window_bounds = array<i64: 1, 128>}, {pipeline_mode = #tpu.pipeline_mode<synchronous>, transform_indices = @transform_3, window_bounds = array<i64: 128, 128>}, {pipeline_mode = #tpu.pipeline_mode<synchronous>, transform_indices = @transform_4, window_bounds = array<i64: 1, 128>}, {pipeline_mode = #tpu.pipeline_mode<synchronous>, transform_indices = @transform_5, window_bounds = array<i64: 128, 1024>}, {pipeline_mode = #tpu.pipeline_mode<synchronous>, transform_indices = @transform_6, window_bounds = array<i64: 1, 1024>}, {transform_indices = @transform_7, window_bounds = array<i64: 2, 1024>}]} {
    %c0 = arith.constant 0 : index
    %c0_0 = arith.constant 0 : index
    %0 = vector.load %arg1[%c0, %c0_0] : memref<2x1024xf32, #tpu.memory_space<vmem>>, vector<2x1024xf32>
    %1 = arith.truncf %0 : vector<2x1024xf32> to vector<2x1024xbf16>
    %c0_1 = arith.constant 0 : index
    %c0_2 = arith.constant 0 : index
    %2 = vector.load %arg2[%c0_1, %c0_2] : memref<1024x128xbf16, #tpu.memory_space<vmem>>, vector<1024x128xbf16>
    %cst = arith.constant dense<0.000000e+00> : vector<2x128xf32>
    %3 = tpu.matmul %1, %2, %cst {dimension_numbers = #tpu.dot_dimension_numbers<[1], [0], [0], [1], [0, 0, 1, 1], [], []>} : vector<2x1024xbf16>, vector<1024x128xbf16>, vector<2x128xf32> -> vector<2x128xf32>
    %c0_3 = arith.constant 0 : index
    %c0_4 = arith.constant 0 : index
    %4 = vector.load %arg3[%c0_3, %c0_4] : memref<1x128xf32, #tpu.memory_space<vmem>>, vector<1x128xf32>
    %5 = vector.broadcast %4 : vector<1x128xf32> to vector<2x128xf32>
    %6 = arith.addf %3, %5 : vector<2x128xf32>
    %cst_5 = arith.constant 0.000000e+00 : f32
    %7 = vector.broadcast %cst_5 : f32 to vector<2x128xf32>
    %8 = arith.maximumf %6, %7 : vector<2x128xf32>
    %9 = arith.truncf %8 : vector<2x128xf32> to vector<2x128xbf16>
    %c0_6 = arith.constant 0 : index
    %c0_7 = arith.constant 0 : index
    %10 = vector.load %arg4[%c0_6, %c0_7] : memref<128x128xbf16, #tpu.memory_space<vmem>>, vector<128x128xbf16>
    %cst_8 = arith.constant dense<0.000000e+00> : vector<2x128xf32>
    %11 = tpu.matmul %9, %10, %cst_8 {dimension_numbers = #tpu.dot_dimension_numbers<[1], [0], [0], [1], [0, 0, 1, 1], [], []>} : vector<2x128xbf16>, vector<128x128xbf16>, vector<2x128xf32> -> vector<2x128xf32>
    %c0_9 = arith.constant 0 : index
    %c0_10 = arith.constant 0 : index
    %12 = vector.load %arg5[%c0_9, %c0_10] : memref<1x128xf32, #tpu.memory_space<vmem>>, vector<1x128xf32>
    %13 = vector.broadcast %12 : vector<1x128xf32> to vector<2x128xf32>
    %14 = arith.addf %11, %13 : vector<2x128xf32>
    %cst_11 = arith.constant 0.000000e+00 : f32
    %15 = vector.broadcast %cst_11 : f32 to vector<2x128xf32>
    %16 = arith.maximumf %14, %15 : vector<2x128xf32>
    %17 = arith.truncf %16 : vector<2x128xf32> to vector<2x128xbf16>
    %c0_12 = arith.constant 0 : index
    %c0_13 = arith.constant 0 : index
    %18 = vector.load %arg6[%c0_12, %c0_13] : memref<128x1024xbf16, #tpu.memory_space<vmem>>, vector<128x1024xbf16>
    %cst_14 = arith.constant dense<0.000000e+00> : vector<2x1024xf32>
    %19 = tpu.matmul %17, %18, %cst_14 {dimension_numbers = #tpu.dot_dimension_numbers<[1], [0], [0], [1], [0, 0, 1, 1], [], []>} : vector<2x128xbf16>, vector<128x1024xbf16>, vector<2x1024xf32> -> vector<2x1024xf32>
    %c0_15 = arith.constant 0 : index
    %c0_16 = arith.constant 0 : index
    %20 = vector.load %arg7[%c0_15, %c0_16] : memref<1x1024xf32, #tpu.memory_space<vmem>>, vector<1x1024xf32>
    %21 = vector.broadcast %20 : vector<1x1024xf32> to vector<2x1024xf32>
    %22 = arith.addf %19, %21 : vector<2x1024xf32>
    %23 = arith.negf %22 : vector<2x1024xf32>
    %24 = math.exp %23 : vector<2x1024xf32>
    %cst_17 = arith.constant 1.000000e+00 : f32
    %25 = vector.broadcast %cst_17 : f32 to vector<2x1024xf32>
    %26 = arith.addf %25, %24 : vector<2x1024xf32>
    %27 = arith.divf %25, %26 : vector<2x1024xf32>
    %28 = arith.truncf %27 : vector<2x1024xf32> to vector<2x1024xbf16>
    %c0_18 = arith.constant 0 : index
    %c0_19 = arith.constant 0 : index
    %29 = vector.load %arg8[%c0_18, %c0_19] : memref<2x1024xbf16, #tpu.memory_space<vmem>>, vector<2x1024xbf16>
    tpu.vector_store %arg8[%c0_18, %c0_19], %28 {strides = array<i32>} : memref<2x1024xbf16, #tpu.memory_space<vmem>>, vector<2x1024xbf16>,
    return
  }
  func.func @transform_0(%arg0: i32) -> (i32, i32) {
    %c0_i32 = arith.constant 0 : i32
    %c0_i32_0 = arith.constant 0 : i32
    return %arg0, %c0_i32 : i32, i32
  }
  func.func @transform_1(%arg0: i32) -> (i32, i32) {
    %c0_i32 = arith.constant 0 : i32
    %c0_i32_0 = arith.constant 0 : i32
    %c0_i32_1 = arith.constant 0 : i32
    return %c0_i32, %c0_i32_0 : i32, i32
  }
  func.func @transform_2(%arg0: i32) -> (i32, i32) {
    %c0_i32 = arith.constant 0 : i32
    %c0_i32_0 = arith.constant 0 : i32
    %c0_i32_1 = arith.constant 0 : i32
    return %c0_i32, %c0_i32_0 : i32, i32
  }
  func.func @transform_3(%arg0: i32) -> (i32, i32) {
    %c0_i32 = arith.constant 0 : i32
    %c0_i32_0 = arith.constant 0 : i32
    %c0_i32_1 = arith.constant 0 : i32
    return %c0_i32, %c0_i32_0 : i32, i32
  }
  func.func @transform_4(%arg0: i32) -> (i32, i32) {
    %c0_i32 = arith.constant 0 : i32
    %c0_i32_0 = arith.constant 0 : i32
    %c0_i32_1 = arith.constant 0 : i32
    return %c0_i32, %c0_i32_0 : i32, i32
  }
  func.func @transform_5(%arg0: i32) -> (i32, i32) {
    %c0_i32 = arith.constant 0 : i32
    %c0_i32_0 = arith.constant 0 : i32
    %c0_i32_1 = arith.constant 0 : i32
    return %c0_i32, %c0_i32_0 : i32, i32
  }
  func.func @transform_6(%arg0: i32) -> (i32, i32) {
    %c0_i32 = arith.constant 0 : i32
    %c0_i32_0 = arith.constant 0 : i32
    %c0_i32_1 = arith.constant 0 : i32
    return %c0_i32, %c0_i32_0 : i32, i32
  }
  func.func @transform_7(%arg0: i32) -> (i32, i32) {
    %c0_i32 = arith.constant 0 : i32
    %c0_i32_0 = arith.constant 0 : i32
    return %arg0, %c0_i32 : i32, i32
  }
}

</mosaic_0001>

<bundles_post_ra>
// kernel: tpu_custom_call.1
= control target key start
LH: loop header
LB: loop body
LE: loop exit
PB: predicated region body
PF: predicated region fallthrough
CT: control target
= control target key end

     0   :  { %12 = vsyncpa [#allocation3], 0  ;;  %s2320_s0 = inlined_call_operand.hbm [shape: f32[2,1024], index: 0, kind: input, shape index: {}]   ;;  %s2321_s1 = inlined_call_operand.hbm [shape: bf16[1024,128], index: 1, kind: input, shape index: {}]   ;;  %s2322_s2 = inlined_call_operand.vmem [shape: f32[1,128], index: 2, kind: input, shape index: {}]   ;;  %s2323_s3 = inlined_call_operand.hbm [shape: bf16[128,128], index: 3, kind: input, shape index: {}]   ;;  %s2324_s4 = inlined_call_operand.vmem [shape: f32[1,128], index: 4, kind: input, shape index: {}]   ;;  %s2325_s5 = inlined_call_operand.hbm [shape: bf16[128,1024], index: 5, kind: input, shape index: {}]   ;;  %s2326_s6 = inlined_call_operand.vmem [shape: f32[1,1024], index: 6, kind: input, shape index: {}]   ;;  %s2327_s7 = inlined_call_operand.hbm [shape: bf16[2,1024], index: 7, kind: output, shape index: {}]  }
   0x1   :  { %13 = vsyncpa [#allocation6], 0 }
   0x2   :  { %14 = vsyncpa [#allocation9], 0 }
   0x3   :  { %15 = vsyncpa [#allocation4], 0  ;;  %s2156_s24 = smov [#allocation5]   ;;  %s2038_s28 = scalar_lea.hbm %s2321_s1, 8192 }
   0x4   :  { %s31_s25 = sshll.u32 %s2156_s24, 4  ;;  %p2039_p0 = scmp.ne.s32.totalorder %s2321_s1, %s2038_s28  ;;  %s32_s25 = int_to_ptr.vmem [resolvable:$true] %s31_s25 }
   0x5   :  { %p2042_p1 = scmp.lt.u32.totalorder %s2038_s28, %s2321_s1 }
   0x7   :  { %p2044_p2 = pnand %p2042_p1, %p2039_p0 }
   0x9   :  { %2047 = shalt.err (!%p2044_p2)
}
   0xa   :  { %s2048_s10 = scalar_lea.vmem %s32_s25, 8192  ;;  %p2053_p4 = scmp.lt.s32.totalorder %s32_s25, %s32_s25 }
   0xb   :  { %p2049_p3 = scmp.ne.s32.totalorder %s32_s25, %s2048_s10  ;;  %p2054_p5 = scmp.lt.s32.totalorder %s2048_s10, %s2048_s10 }
   0xd   :  { %p2055_p6 = por %p2054_p5, %p2053_p4 }
   0xf   :  { %p2056_p7 = pnand %p2055_p6, %p2049_p3 }
  0x11   :  { %2059 = shalt.err (!%p2056_p7)
}
  0x12   :  { %s2157_s11 = smov 64   ;;  %s2158_s12 = smov 4  }
  0x13   :  { %37 = dma.hbm_to_vmem [thread:$0]  %s2321_s1, 8192, %s32_s25, [#allocation6], %s2157_s11, %s2157_s11, %s2158_s12  }
  0x14   :  { %s2159_s15 = smov [#allocation2]   ;;  %s2160_s17 = smov [#allocation7]  }
  0x15   :  { %s22_s16 = sshll.u32 %s2159_s15, 4  ;;  %s45_s18 = sshll.u32 %s2160_s17, 4  ;;  %s23_s16 = int_to_ptr.vmem [resolvable:$true] %s22_s16  ;;  %s46_s18 = int_to_ptr.vmem [resolvable:$true] %s45_s18 }
  0x16   :  { %s2060_s21 = scalar_lea.hbm %s2320_s0, 256 }
  0x17   :  { %p2061_p8 = scmp.ne.s32.totalorder %s2320_s0, %s2060_s21  ;;  %p2064_p9 = scmp.lt.u32.totalorder %s2060_s21, %s2320_s0 }
  0x19   :  { %p2066_p10 = pnand %p2064_p9, %p2061_p8 }
  0x1b   :  { %2069 = shalt.err (!%p2066_p10)
}
  0x1c   :  { %s2070_s1 = scalar_lea.vmem %s23_s16, 256  ;;  %p2075_p12 = scmp.lt.s32.totalorder %s23_s16, %s23_s16 }
  0x1d   :  { %p2071_p11 = scmp.ne.s32.totalorder %s23_s16, %s2070_s1  ;;  %p2076_p13 = scmp.lt.s32.totalorder %s2070_s1, %s2070_s1 }
  0x1f   :  { %p2077_p0 = por %p2076_p13, %p2075_p12 }
  0x21   :  { %p2078_p1 = pnand %p2077_p0, %p2071_p11 }
  0x23   :  { %2081 = shalt.err (!%p2078_p1)
}
  0x24   :  { %25 = dma.hbm_to_vmem [thread:$0]  %s2320_s0, 256, %s23_s16, [#allocation3]  }
  0x25   :  { %s2082_s30 = scalar_lea.hbm %s2323_s3, 1024 }
  0x26   :  { %p2083_p2 = scmp.ne.s32.totalorder %s2323_s3, %s2082_s30  ;;  %p2086_p3 = scmp.lt.u32.totalorder %s2082_s30, %s2323_s3 }
  0x28   :  { %p2088_p4 = pnand %p2086_p3, %p2083_p2 }
  0x2a   :  { %2091 = shalt.err (!%p2088_p4)
}
  0x2b   :  { %s2092_s14 = scalar_lea.vmem %s46_s18, 1024  ;;  %p2097_p6 = scmp.lt.s32.totalorder %s46_s18, %s46_s18 }
  0x2c   :  { %p2093_p5 = scmp.ne.s32.totalorder %s46_s18, %s2092_s14  ;;  %p2098_p7 = scmp.lt.s32.totalorder %s2092_s14, %s2092_s14 }
  0x2e   :  { %p2099_p8 = por %p2098_p7, %p2097_p6 }
  0x30   :  { %p2100_p9 = pnand %p2099_p8, %p2093_p5 }
  0x32   :  { %2103 = shalt.err (!%p2100_p9)
}
  0x33   :  { %51 = dma.hbm_to_vmem [thread:$0]  %s2323_s3, 1024, %s46_s18, [#allocation6], %s2157_s11, %s2157_s11, %s2158_s12  }
  0x34   :  { %s2161_s16 = smov [#allocation8]   ;;  %s2104_s21 = scalar_lea.hbm %s2325_s5, 8192 }
  0x35   :  { %s59_s17 = sshll.u32 %s2161_s16, 4  ;;  %p2105_p10 = scmp.ne.s32.totalorder %s2325_s5, %s2104_s21  ;;  %s60_s17 = int_to_ptr.vmem [resolvable:$true] %s59_s17 }
  0x36   :  { %p2108_p11 = scmp.lt.u32.totalorder %s2104_s21, %s2325_s5 }
  0x38   :  { %p2110_p12 = pnand %p2108_p11, %p2105_p10 }
  0x3a   :  { %2113 = shalt.err (!%p2110_p12)
}
  0x3b   :  { %s2114_s1 = scalar_lea.vmem %s60_s17, 8192  ;;  %p2119_p0 = scmp.lt.s32.totalorder %s60_s17, %s60_s17 }
  0x3c   :  { %p2115_p13 = scmp.ne.s32.totalorder %s60_s17, %s2114_s1  ;;  %p2120_p1 = scmp.lt.s32.totalorder %s2114_s1, %s2114_s1 }
  0x3e   :  { %p2121_p2 = por %p2120_p1, %p2119_p0 }
  0x40   :  { %p2122_p3 = pnand %p2121_p2, %p2115_p13 }
  0x42   :  { %2125 = shalt.err (!%p2122_p3)
}
  0x43   :  { %s2162_s3 = smov 512   ;;  %s2163_s11 = smov 32  }
  0x44   :  { %65 = dma.hbm_to_vmem [thread:$0]  %s2325_s5, 8192, %s60_s17, [#allocation9], %s2162_s3, %s2162_s3, %s2163_s11  }
  0x45   :  { %2148 = dma.done.wait [#allocation3], 256  }
  0x46   :  { %2149 = vsyncadd [#allocation3], 4294967040 }
  0x47   :  { %2150 = dma.done.wait [#allocation6], 9216  }
  0x48   :  { %2151 = vsyncadd [#allocation6], 4294958080 }
  0x49   :  { %2152 = dma.done.wait [#allocation9], 8192  }
  0x4a   :  { %2153 = vsyncadd [#allocation9], 4294959104  ;;  %v1932_v0 = vld [vmem:[#allocation5 + $0x40] sm:$0xff]   ;;  %v1936_v4 = vld [vmem:[#allocation5 + $0x48] sm:$0xff]   ;;  %v2164_v22 = vmov 1983009808   ;;  %v89_v24 = vlaneseq }
  0x4b   :  { %v1933_v1 = vld [vmem:[#allocation5 + $0xc0] sm:$0xff]   ;;  %1801 = vmatprep.subr.bf16.mxu0 %v1932_v0  ;;  %v1937_v5 = vld [vmem:[#allocation5 + $0xc8] sm:$0xff]   ;;  %v1940_v8 = vld [vmem:[#allocation5 + $0x50] sm:$0xff]   ;;  %v87_v23 = vunpack.c.l.s4 %v2164_v22  ;;  %vm2166_vm0 = vmmov 0  }
  0x4c   :  { %v1934_v2 = vld [vmem:[#allocation5] sm:$0xff]   ;;  %1823 = vmatprep.subr.bf16.mxu1 %v1933_v1  ;;  %v1938_v6 = vld [vmem:[#allocation5 + $0x8] sm:$0xff]   ;;  %v1941_v9 = vld [vmem:[#allocation5 + $0xd0] sm:$0xff]   ;;  %v2264_v30 = vshrl.u32 %v89_v24, 7 }
  0x4d   :  { %v1935_v3 = vld [vmem:[#allocation5 + $0x80] sm:$0xff]   ;;  %1802 = vmatpush3.bf16.msra.mxu0 %v1934_v2  ;;  %v1939_v7 = vld [vmem:[#allocation5 + $0x88] sm:$0xff]   ;;  %v1942_v10 = vld [vmem:[#allocation5 + $0x10] sm:$0xff]   ;;  %v88_v29 = vunpack.c.0.s8 %v87_v23 }
  0x4e   :  { %1824 = vmatpush3.bf16.msra.mxu1 %v1935_v3  ;;  %1803 = vmatprep.subr.bf16.mxu0 %v1936_v4  ;;  %v1943_v11 = vld [vmem:[#allocation5 + $0x90] sm:$0xff]   ;;  %v1944_v12 = vld [vmem:[#allocation5 + $0x58] sm:$0xff]   ;;  %v1948_v16 = vld [vmem:[#allocation5 + $0x60] sm:$0xff]  }
  0x4f   :  { %1825 = vmatprep.subr.bf16.mxu1 %v1937_v5  ;;  %v1945_v13 = vld [vmem:[#allocation5 + $0xd8] sm:$0xff]   ;;  %v1949_v17 = vld [vmem:[#allocation5 + $0xe0] sm:$0xff]   ;;  %v1952_v20 = vld [vmem:[#allocation5 + $0x68] sm:$0xff]   ;;  %v2267_v35 = vsub.s32 %v88_v29, %v2264_v30 }
  0x50   :  { %v1946_v14 = vld [vmem:[#allocation5 + $0x18] sm:$0xff]   ;;  %v1950_v18 = vld [vmem:[#allocation5 + $0x20] sm:$0xff]   ;;  %v1953_v21 = vld [vmem:[#allocation5 + $0xe8] sm:$0xff]  }
  0x51   :  { %1804 = vmatpush3.bf16.msra.mxu0 %v1938_v6  ;;  %v1947_v15 = vld [vmem:[#allocation5 + $0x98] sm:$0xff]   ;;  %v1951_v19 = vld [vmem:[#allocation5 + $0xa0] sm:$0xff]   ;;  %v1954_v25 = vld [vmem:[#allocation5 + $0x28] sm:$0xff]  }
  0x52   :  { %1826 = vmatpush3.bf16.msra.mxu1 %v1939_v7  ;;  %1805 = vmatprep.subr.bf16.mxu0 %v1940_v8  ;;  %v1955_v26 = vld [vmem:[#allocation5 + $0xa8] sm:$0xff]   ;;  %v1956_v27 = vld [vmem:[#allocation5 + $0x70] sm:$0xff]   ;;  %v1960_v33 = vld [vmem:[#allocation5 + $0x78] sm:$0xff]  }
  0x53   :  { %1827 = vmatprep.subr.bf16.mxu1 %v1941_v9  ;;  %v1957_v28 = vld [vmem:[#allocation5 + $0xf0] sm:$0xff]   ;;  %v1961_v34 = vld [vmem:[#allocation5 + $0xf8] sm:$0xff]   ;;  %v1965_v41 = vld [vmem:[#allocation5 + $0x140] sm:$0xff]  }
  0x54   :  { %v1958_v31 = vld [vmem:[#allocation5 + $0x30] sm:$0xff]   ;;  %v1962_v36 = vld [vmem:[#allocation5 + $0x38] sm:$0xff]   ;;  %v1966_v42 = vld [vmem:[#allocation5 + $0x1c0] sm:$0xff]  }
  0x55   :  { %1806 = vmatpush3.bf16.msra.mxu0 %v1942_v10  ;;  %v1959_v32 = vld [vmem:[#allocation5 + $0xb0] sm:$0xff]   ;;  %v1963_v37 = vld [vmem:[#allocation5 + $0xb8] sm:$0xff]   ;;  %v1967_v46 = vld [vmem:[#allocation5 + $0x100] sm:$0xff]  }
  0x56   :  { %1828 = vmatpush3.bf16.msra.mxu1 %v1943_v11  ;;  %1807 = vmatprep.subr.bf16.mxu0 %v1944_v12  ;;  %v81_v38 = vld [vmem:[#allocation2] sm:$0xff]  ;;  %v1968_v49 = vld [vmem:[#allocation5 + $0x180] sm:$0xff]   ;;  %v1969_v51 = vld [vmem:[#allocation5 + $0x148] sm:$0xff]  }
  0x57   :  { %1829 = vmatprep.subr.bf16.mxu1 %v1945_v13  ;;  %v92_v39 = vrot.slane %v81_v38, %v2267_v35  ;;  %v85_v40 = vcombine.high %v81_v38, %v81_v38  ;;  %v1970_v53 = vld [vmem:[#allocation5 + $0x1c8] sm:$0xff]   ;;  %v1973_v56 = vld [vmem:[#allocation5 + $0x150] sm:$0xff]   ;;  %v1977_v60 = vld [vmem:[#allocation5 + $0x158] sm:$0xff]  }
  0x58   :  { %v1971_v54 = vld [vmem:[#allocation5 + $0x108] sm:$0xff]   ;;  %v1974_v57 = vld [vmem:[#allocation5 + $0x1d0] sm:$0xff]   ;;  %v1978_v61 = vld [vmem:[#allocation5 + $0x1d8] sm:$0xff]  }
  0x59   :  { %1808 = vmatpush3.bf16.msra.mxu0 %v1946_v14  ;;  %v100_v43 = vcombine.high %v92_v39, %v92_v39  ;;  %v99_v44 = vrot.slane %v85_v40, %v2267_v35  ;;  %v127_v45 = vpack.c.bf16 %v92_v39, %v92_v39  ;;  %v1972_v55 = vld [vmem:[#allocation5 + $0x188] sm:$0xff]   ;;  %v1975_v58 = vld [vmem:[#allocation5 + $0x110] sm:$0xff]   ;;  %v1979_v62 = vld [vmem:[#allocation5 + $0x118] sm:$0xff]  }
  0x5a   :  { %1830 = vmatpush3.bf16.msra.mxu1 %v1947_v15  ;;  %1809 = vmatprep.subr.bf16.mxu0 %v1948_v16  ;;  %v1976_v59 = vld [vmem:[#allocation5 + $0x190] sm:$0xff]   ;;  %v1980_v63 = vld [vmem:[#allocation5 + $0x198] sm:$0xff]   ;;  %v1981_v0 = vld [vmem:[#allocation5 + $0x160] sm:$0xff]  }
  0x5b   :  { %1831 = vmatprep.subr.bf16.mxu1 %v1949_v17  ;;  %v128_v47 = vpack.c.bf16 %v100_v43, %v100_v43  ;;  %v101_v48 = vcombine.high %v99_v44, %v99_v44  ;;  %v129_v50 = vpack.c.bf16 %v99_v44, %v99_v44  ;;  %v1982_v1 = vld [vmem:[#allocation5 + $0x1e0] sm:$0xff]   ;;  %v1985_v4 = vld [vmem:[#allocation5 + $0x168] sm:$0xff]   ;;  %v1989_v8 = vld [vmem:[#allocation5 + $0x170] sm:$0xff]  }
  0x5c   :  { %v1983_v2 = vld [vmem:[#allocation5 + $0x120] sm:$0xff]   ;;  %v1986_v5 = vld [vmem:[#allocation5 + $0x1e8] sm:$0xff]   ;;  %v1990_v9 = vld [vmem:[#allocation5 + $0x1f0] sm:$0xff]  }
  0x5d   :  { %1810 = vmatpush3.bf16.msra.mxu0 %v1950_v18  ;;  %686 = vmatprep.mubr.bf16.mxu0 %v128_v47  ;;  %v130_v52 = vpack.c.bf16 %v101_v48, %v101_v48  ;;  %v1984_v3 = vld [vmem:[#allocation5 + $0x1a0] sm:$0xff]   ;;  %v1987_v6 = vld [vmem:[#allocation5 + $0x128] sm:$0xff]   ;;  %v1991_v10 = vld [vmem:[#allocation5 + $0x130] sm:$0xff]  }
  0x5e   :  { %1832 = vmatpush3.bf16.msra.mxu1 %v1951_v19  ;;  %1811 = vmatprep.subr.bf16.mxu0 %v1952_v20  ;;  %v1988_v7 = vld [vmem:[#allocation5 + $0x1a8] sm:$0xff]   ;;  %v1992_v11 = vld [vmem:[#allocation5 + $0x1b0] sm:$0xff]   ;;  %v1993_v12 = vld [vmem:[#allocation5 + $0x178] sm:$0xff]  }
  0x5f   :  { %1833 = vmatprep.subr.bf16.mxu1 %v1953_v21  ;;  %726 = vmatprep.mubr.bf16.mxu1 %v130_v52  ;;  %v1994_v13 = vld [vmem:[#allocation5 + $0x1f8] sm:$0xff]   ;;  %v2000_v29 = vld [vmem:[#allocation7 + $0x10] sm:$0xff]   ;;  %v2273_v38 = vld [vmem:[#allocation8 + $0x8] sm:$0xff] }
  0x60   :  { %v1995_v14 = vld [vmem:[#allocation5 + $0x138] sm:$0xff]   ;;  %v941_v43 = vld [vmem:[#allocation8 + $0x60] sm:$0xff] }
  0x61   :  { %1812 = vmatpush3.bf16.msra.mxu0 %v1954_v25  ;;  %v82_v15 = vld [vmem:[#allocation2 + $0x8] sm:$0xff]  ;;  %v945_v48 = vld [vmem:[#allocation8 + $0x80] sm:$0xff] }
  0x62   :  { %1834 = vmatpush3.bf16.msra.mxu1 %v1955_v26  ;;  %1813 = vmatprep.subr.bf16.mxu0 %v1956_v27  ;;  %v1996_v16 = vld [vmem:[#allocation5 + $0x1b8] sm:$0xff]   ;;  %v109_v17 = vrot.slane %v82_v15, %v2267_v35  ;;  %v102_v18 = vcombine.high %v82_v15, %v82_v15  ;;  %v1998_v26 = vld [vmem:[#allocation7] sm:$0xff]   ;;  %v2165_v27 = vmov 0.0  }
  0x63   :  { %1835 = vmatprep.subr.bf16.mxu1 %v1957_v28  ;;  %v1999_v28 = vld [vmem:[#allocation7 + $0x8] sm:$0xff]   ;;  %v953_v52 = vld [vmem:[#allocation8 + $0xc0] sm:$0xff] }
  0x64   :  { %v117_v19 = vcombine.high %v109_v17, %v109_v17  ;;  %v116_v20 = vrot.slane %v102_v18, %v2267_v35  ;;  %v131_v21 = vpack.c.bf16 %v109_v17, %v109_v17  ;;  %v2005_v35 = vld [vmem:[#allocation7 + $0x38] sm:$0xff]  }
  0x65   :  { %1814 = vmatpush3.bf16.msra.mxu0 %v1958_v31  ;;  %v2001_v31 = vld [vmem:[#allocation7 + $0x18] sm:$0xff]  }
  0x66   :  { %1836 = vmatpush3.bf16.msra.mxu1 %v1959_v32  ;;  %1815 = vmatprep.subr.bf16.mxu0 %v1960_v33  ;;  %v132_v22 = vpack.c.bf16 %v117_v19, %v117_v19  ;;  %v118_v23 = vcombine.high %v116_v20, %v116_v20  ;;  %v133_v24 = vpack.c.bf16 %v116_v20, %v116_v20  ;;  %v2002_v32 = vld [vmem:[#allocation7 + $0x20] sm:$0xff]   ;;  %v2003_v33 = vld [vmem:[#allocation7 + $0x28] sm:$0xff]  }
  0x67   :  { %1837 = vmatprep.subr.bf16.mxu1 %v1961_v34  ;;  %v2004_v34 = vld [vmem:[#allocation7 + $0x30] sm:$0xff]  }
  0x68   :  { %v134_v25 = vpack.c.bf16 %v118_v23, %v118_v23 }
  0x69   :  { %1816 = vmatpush3.bf16.msra.mxu0 %v1962_v36  ;;  %v929_v36 = vld [vmem:[#allocation8] sm:$0xff] }
  0x6a   :  { %1838 = vmatpush3.bf16.msra.mxu1 %v1963_v37  ;;  %1845 = vmatprep.subr.bf16.mxu0 %v1965_v41  ;;  %v933_v37 = vld [vmem:[#allocation8 + $0x20] sm:$0xff]  ;;  %v2275_v41 = vld [vmem:[#allocation8 + $0x28] sm:$0xff] }
  0x6b   :  { %1867 = vmatprep.subr.bf16.mxu1 %v1966_v42  ;;  %v1725_v39 = vcombine.low %v929_v36, %v933_v37  ;;  %v1726_v40 = vcombine.high %v929_v36, %v933_v37  ;;  %v937_v42 = vld [vmem:[#allocation8 + $0x40] sm:$0xff]  ;;  %v1727_v44 = vcombine.low %v2273_v38, %v2275_v41  ;;  %v950_v36 = vld [vmem:[#allocation8 + $0xa8] sm:$0xff] }
  0x6c   :  { %687 = vmatmul.mubr.bf16.vlgmr.msra.gmra.mrb[0].mxu0 %v127_v45  ;;  %v1728_v45 = vcombine.high %v2273_v38, %v2275_v41  ;;  %v1733_v47 = vcombine.low %v937_v42, %v941_v43 }
  0x6d   :  { %1846 = vmatpush3.bf16.msra.mxu0 %v1967_v46  ;;  %727 = vmatmul.mubr.bf16.vlgmr.msra.gmra.mrb[0].mxu1 %v129_v50  ;;  %v1734_v46 = vcombine.high %v937_v42, %v941_v43  ;;  %v958_v42 = vld [vmem:[#allocation8 + $0xe8] sm:$0xff] }
  0x6e   :  { %1847 = vmatprep.subr.bf16.mxu0 %v1969_v51  ;;  %1868 = vmatpush3.bf16.msra.mxu1 %v1968_v49  ;;  %v949_v49 = vld [vmem:[#allocation8 + $0xa0] sm:$0xff] }
  0x6f   :  { %1869 = vmatprep.subr.bf16.mxu1 %v1970_v53  ;;  %766 = vmatprep.mubr.bf16.mxu0 %v132_v22  ;;  %v1742_v50 = vcombine.high %v945_v48, %v949_v49  ;;  %v1741_v51 = vcombine.low %v945_v48, %v949_v49  ;;  %v957_v53 = vld [vmem:[#allocation8 + $0xe0] sm:$0xff] }
  0x70   :  { %806 = vmatprep.mubr.bf16.mxu1 %v134_v25 }
  0x71   :  { %1848 = vmatpush3.bf16.msra.mxu0 %v1971_v54  ;;  %v1750_v54 = vcombine.high %v953_v52, %v957_v53 }
  0x72   :  { %1849 = vmatprep.subr.bf16.mxu0 %v1973_v56  ;;  %1870 = vmatpush3.bf16.msra.mxu1 %v1972_v55  ;;  %v1749_v55 = vcombine.low %v953_v52, %v957_v53  ;;  %v961_v56 = vld [vmem:[#allocation8 + $0x100] sm:$0xff]  ;;  %v982_v52 = vld [vmem:[#allocation8 + $0x1a8] sm:$0xff] }
  0x73   :  { %1871 = vmatprep.subr.bf16.mxu1 %v1974_v57  ;;  %v965_v57 = vld [vmem:[#allocation8 + $0x120] sm:$0xff] }
  0x75   :  { %1850 = vmatpush3.bf16.msra.mxu0 %v1975_v58  ;;  %v1758_v58 = vcombine.high %v961_v56, %v965_v57 }
  0x76   :  { %1851 = vmatprep.subr.bf16.mxu0 %v1977_v60  ;;  %1872 = vmatpush3.bf16.msra.mxu1 %v1976_v59  ;;  %v1757_v59 = vcombine.low %v961_v56, %v965_v57  ;;  %v969_v60 = vld [vmem:[#allocation8 + $0x140] sm:$0xff] }
  0x77   :  { %1873 = vmatprep.subr.bf16.mxu1 %v1978_v61  ;;  %v973_v61 = vld [vmem:[#allocation8 + $0x160] sm:$0xff] }
  0x78   :  { %v985_v56 = vld [vmem:[#allocation8 + $0x1c0] sm:$0xff] }
  0x79   :  { %1852 = vmatpush3.bf16.msra.mxu0 %v1979_v62  ;;  %v1766_v62 = vcombine.high %v969_v60, %v973_v61  ;;  %v989_v57 = vld [vmem:[#allocation8 + $0x1e0] sm:$0xff] }
  0x7a   :  { %1853 = vmatprep.subr.bf16.mxu0 %v1981_v0  ;;  %1874 = vmatpush3.bf16.msra.mxu1 %v1980_v63  ;;  %v1765_v63 = vcombine.low %v969_v60, %v973_v61  ;;  %v977_v0 = vld [vmem:[#allocation8 + $0x180] sm:$0xff]  ;;  %v990_v60 = vld [vmem:[#allocation8 + $0x1e8] sm:$0xff]  ;;  %v1781_v61 = vcombine.low %v985_v56, %v989_v57 }
  0x7b   :  { %1875 = vmatprep.subr.bf16.mxu1 %v1982_v1  ;;  %v981_v1 = vld [vmem:[#allocation8 + $0x1a0] sm:$0xff] }
  0x7d   :  { %1854 = vmatpush3.bf16.msra.mxu0 %v1983_v2  ;;  %v1774_v2 = vcombine.high %v977_v0, %v981_v1 }
  0x7e   :  { %1855 = vmatprep.subr.bf16.mxu0 %v1985_v4  ;;  %1876 = vmatpush3.bf16.msra.mxu1 %v1984_v3  ;;  %v1773_v3 = vcombine.low %v977_v0, %v981_v1  ;;  %v931_v0 = vld [vmem:[#allocation8 + $0x10] sm:$0xff] }
  0x7f   :  { %1877 = vmatprep.subr.bf16.mxu1 %v1986_v5  ;;  %v1651_v5 = vld [vmem:[%s2322_s2] ss:$0 sm:$0xff] }
  0x80   :  { %v935_v1 = vld [vmem:[#allocation8 + $0x30] sm:$0xff] }
  0x81   :  { %1856 = vmatpush3.bf16.msra.mxu0 %v1987_v6 }
  0x82   :  { %1857 = vmatprep.subr.bf16.mxu0 %v1989_v8  ;;  %1878 = vmatpush3.bf16.msra.mxu1 %v1988_v7 }
  0x83   :  { %1879 = vmatprep.subr.bf16.mxu1 %v1990_v9 }
  0x85   :  { %1858 = vmatpush3.bf16.msra.mxu0 %v1991_v10 }
  0x86   :  { %1859 = vmatprep.subr.bf16.mxu0 %v1993_v12  ;;  %1880 = vmatpush3.bf16.msra.mxu1 %v1992_v11 }
  0x87   :  { %1881 = vmatprep.subr.bf16.mxu1 %v1994_v13 }
  0x89   :  { %1860 = vmatpush3.bf16.msra.mxu0 %v1995_v14 }
  0x8a   :  { %1882 = vmatpush3.bf16.msra.mxu1 %v1996_v16  ;;  %1898 = vmatprep.subr.bf16.mxu0 %v2165_v27 }
  0x8b   :  { %1355 = vmatprep.subr.bf16.mxu1 %v1726_v40  ;;  %v954_v40 = vld [vmem:[#allocation8 + $0xc8] sm:$0xff] }
  0x8c   :  { %767 = vmatmul.mubr.bf16.vlgmr.msra.gmra.mrb[4].mxu0 %v131_v21  ;;  %v1751_v48 = vcombine.low %v954_v40, %v958_v42 }
  0x8d   :  { %807 = vmatmul.mubr.bf16.vlgmr.msra.gmra.mrb[4].mxu1 %v133_v24  ;;  %1899 = vmatpush3.bf16.msra.mxu0 %v1998_v26 }
  0x8e   :  { %1900 = vmatprep.subr.bf16.mxu0 %v2165_v27  ;;  %1914 = vmatprep.mubr.msk.bf16.mxu0 %vm2166_vm0, %v2165_v27 }
  0x8f   :  { %1356 = vmatpush1.bf16.msra.mxu1 %v1725_v39 }
  0x90   :  { %1357 = vmatprep.subr.bf16.mxu1 %v1734_v46  ;;  %v962_v46 = vld [vmem:[#allocation8 + $0x108] sm:$0xff] }
  0x91   :  { %1901 = vmatpush3.bf16.msra.mxu0 %v1999_v28 }
  0x92   :  { %1902 = vmatprep.subr.bf16.mxu0 %v2165_v27 }
  0x93   :  { %1358 = vmatpush1.bf16.msra.mxu1 %v1733_v47  ;;  %v966_v47 = vld [vmem:[#allocation8 + $0x128] sm:$0xff] }
  0x94   :  { %1359 = vmatprep.subr.bf16.mxu1 %v1742_v50  ;;  %v1760_v49 = vcombine.high %v962_v46, %v966_v47  ;;  %v970_v50 = vld [vmem:[#allocation8 + $0x148] sm:$0xff]  ;;  %v1759_v38 = vcombine.low %v962_v46, %v966_v47  ;;  %v968_v46 = vld [vmem:[#allocation8 + $0x138] sm:$0xff] }
  0x95   :  { %1903 = vmatpush3.bf16.msra.mxu0 %v2000_v29  ;;  %v938_v29 = vld [vmem:[#allocation8 + $0x48] sm:$0xff] }
  0x96   :  { %1904 = vmatprep.subr.bf16.mxu0 %v2165_v27 }
  0x97   :  { %1360 = vmatpush1.bf16.msra.mxu1 %v1741_v51  ;;  %v974_v51 = vld [vmem:[#allocation8 + $0x168] sm:$0xff] }
  0x98   :  { %1361 = vmatprep.subr.bf16.mxu1 %v1750_v54  ;;  %v1768_v41 = vcombine.high %v970_v50, %v974_v51  ;;  %v1767_v53 = vcombine.low %v970_v50, %v974_v51  ;;  %v971_v51 = vld [vmem:[#allocation8 + $0x150] sm:$0xff] }
  0x99   :  { %1905 = vmatpush3.bf16.msra.mxu0 %v2001_v31  ;;  %v942_v31 = vld [vmem:[#allocation8 + $0x68] sm:$0xff] }
  0x9a   :  { %1906 = vmatprep.subr.bf16.mxu0 %v2165_v27  ;;  %v1735_v37 = vcombine.low %v938_v29, %v942_v31 }
  0x9b   :  { %1362 = vmatpush1.bf16.msra.mxu1 %v1749_v55 }
  0x9c   :  { %1363 = vmatprep.subr.bf16.mxu1 %v1758_v58  ;;  %v986_v58 = vld [vmem:[#allocation8 + $0x1c8] sm:$0xff] }
  0x9d   :  { %1907 = vmatpush3.bf16.msra.mxu0 %v2002_v32 }
  0x9e   :  { %1908 = vmatprep.subr.bf16.mxu0 %v2165_v27 }
  0x9f   :  { %1364 = vmatpush1.bf16.msra.mxu1 %v1757_v59  ;;  %v1782_v59 = vcombine.high %v985_v56, %v989_v57  ;;  %v979_v56 = vld [vmem:[#allocation8 + $0x190] sm:$0xff] }
  0xa0   :  { %1365 = vmatprep.subr.bf16.mxu1 %v1766_v62  ;;  %v1783_v62 = vcombine.low %v986_v58, %v990_v60  ;;  %v983_v57 = vld [vmem:[#allocation8 + $0x1b0] sm:$0xff] }
  0xa1   :  { %1909 = vmatpush3.bf16.msra.mxu0 %v2003_v33 }
  0xa2   :  { %1910 = vmatprep.subr.bf16.mxu0 %v2165_v27 }
  0xa3   :  { %1366 = vmatpush1.bf16.msra.mxu1 %v1765_v63  ;;  %v1784_v63 = vcombine.high %v986_v58, %v990_v60  ;;  %v980_v58 = vld [vmem:[#allocation8 + $0x198] sm:$0xff] }
  0xa4   :  { %1367 = vmatprep.subr.bf16.mxu1 %v1774_v2  ;;  %v932_v2 = vld [vmem:[#allocation8 + $0x18] sm:$0xff] }
  0xa5   :  { %1911 = vmatpush3.bf16.msra.mxu0 %v2004_v34  ;;  %v1736_v34 = vcombine.high %v938_v29, %v942_v31 }
  0xa6   :  { %1912 = vmatprep.subr.bf16.mxu0 %v2165_v27 }
  0xa7   :  { %1368 = vmatpush1.bf16.msra.mxu1 %v1773_v3  ;;  %v2167_v3 = vmov 0  }
  0xa8   :  { %1369 = vmatprep.subr.bf16.mxu1 %v1782_v59  ;;  %1387 = vmatprep.mubr.bf16.mxu1 %v2167_v3  ;;  %v984_v59 = vld [vmem:[#allocation8 + $0x1b8] sm:$0xff] }
  0xa9   :  { %1913 = vmatpush3.bf16.msra.mxu0 %v2005_v35  ;;  %v946_v35 = vld [vmem:[#allocation8 + $0x88] sm:$0xff] }
  0xaa   :  { %1396 = vmatprep.subr.bf16.mxu0 %v1728_v45  ;;  %v1744_v39 = vcombine.high %v946_v35, %v950_v36  ;;  %v1743_v43 = vcombine.low %v946_v35, %v950_v36  ;;  %v1752_v45 = vcombine.high %v954_v40, %v958_v42  ;;  %v960_v35 = vld [vmem:[#allocation8 + $0xf8] sm:$0xff]  ;;  %v963_v42 = vld [vmem:[#allocation8 + $0x110] sm:$0xff] }
  0xab   :  { %1370 = vmatpush1.bf16.msra.mxu1 %v1781_v61 }
 0x13f   :  { %v1817_v4 = vpop.f32.mrb[0].mxu0 }
 0x140   :  { %v1818_v6 = vpop.f32.mrb[1].mxu0  ;;  %v1839_v7 = vpop.f32.mrb[0].mxu1 }
 0x141   :  { %v1819_v8 = vadd.f32 %v1818_v6, %v1817_v4  ;;  %v1820_v9 = vpop.f32.mrb[2].mxu0  ;;  %v1840_v10 = vpop.f32.mrb[1].mxu1  ;;  %v1729_v4 = vcombine.low %v931_v0, %v935_v1  ;;  %v936_v6 = vld [vmem:[#allocation8 + $0x38] sm:$0xff] }
 0x142   :  { %v1821_v11 = vpop.f32.mrb[3].mxu0  ;;  %v1841_v13 = vadd.f32 %v1840_v10, %v1839_v7  ;;  %v1842_v14 = vpop.f32.mrb[2].mxu1  ;;  %v1731_v7 = vcombine.low %v932_v2, %v936_v6  ;;  %v1716_v9 = vld [vmem:[%s2324_s4] ss:$0 sm:$0xff] }
 0x143   :  { %v689_v12 = vadd.f32 %v1819_v8, %v1651_v5  ;;  %v1843_v15 = vpop.f32.mrb[3].mxu1  ;;  %v1730_v5 = vcombine.high %v931_v0, %v935_v1  ;;  %v1732_v8 = vcombine.high %v932_v2, %v936_v6  ;;  %v987_v0 = vld [vmem:[#allocation8 + $0x1d0] sm:$0xff]  ;;  %v988_v2 = vld [vmem:[#allocation8 + $0x1d8] sm:$0xff] }
 0x144   :  { %v943_v15 = vld [vmem:[#allocation8 + $0x70] sm:$0xff] }
 0x145   :  { %v729_v16 = vadd.f32 %v1841_v13, %v689_v12  ;;  %1437 = vmatprep.subr.bf16.mxu1 %v1730_v5  ;;  %v939_v13 = vld [vmem:[#allocation8 + $0x50] sm:$0xff]  ;;  %v1779_v5 = vcombine.low %v980_v58, %v984_v59 }
 0x146   :  { %v991_v1 = vld [vmem:[#allocation8 + $0x1f0] sm:$0xff] }
 0x147   :  { %v1786_v6 = vcombine.high %v987_v0, %v991_v1 }
 0x15f   :  { %v1861_v17 = vpop.f32.mrb[4].mxu0 }
 0x160   :  { %v1862_v18 = vpop.f32.mrb[5].mxu0  ;;  %v1883_v19 = vpop.f32.mrb[4].mxu1 }
 0x161   :  { %v1863_v20 = vadd.f32 %v1862_v18, %v1861_v17  ;;  %v1864_v21 = vpop.f32.mrb[6].mxu0  ;;  %v1884_v22 = vpop.f32.mrb[5].mxu1  ;;  %v944_v17 = vld [vmem:[#allocation8 + $0x78] sm:$0xff] }
 0x162   :  { %v1865_v23 = vpop.f32.mrb[7].mxu0  ;;  %v1885_v25 = vadd.f32 %v1884_v22, %v1883_v19  ;;  %v1886_v26 = vpop.f32.mrb[6].mxu1  ;;  %v1738_v21 = vcombine.high %v939_v13, %v943_v15 }
 0x163   :  { %v769_v24 = vadd.f32 %v1863_v20, %v729_v16  ;;  %v1887_v27 = vpop.f32.mrb[7].mxu1  ;;  %v940_v16 = vld [vmem:[#allocation8 + $0x58] sm:$0xff]  ;;  %v947_v23 = vld [vmem:[#allocation8 + $0x90] sm:$0xff] }
 0x164   :  { %v1740_v22 = vcombine.high %v940_v16, %v944_v17  ;;  %v952_v26 = vld [vmem:[#allocation8 + $0xb8] sm:$0xff]  ;;  %v1737_v27 = vcombine.low %v939_v13, %v943_v15  ;;  %v1001_v13 = vsub.s32 1, %v2264_v30 }
 0x165   :  { %v809_v28 = vadd.f32 %v1885_v25, %v769_v24  ;;  %v951_v24 = vld [vmem:[#allocation8 + $0xb0] sm:$0xff]  ;;  %v948_v25 = vld [vmem:[#allocation8 + $0x98] sm:$0xff] }
 0x166   :  { %v1746_v29 = vcombine.high %v947_v23, %v951_v24  ;;  %v1748_v31 = vcombine.high %v948_v25, %v952_v26  ;;  %v1745_v36 = vcombine.low %v947_v23, %v951_v24 }
 0x167   :  { %v814_v32 = vmax.f32 %v809_v28, 0.0  ;;  %v1739_v28 = vcombine.low %v940_v16, %v944_v17 }
 0x169   :  { %v815_v33 = vpack.c.bf16 %v814_v32, %v814_v32  ;;  %v955_v32 = vld [vmem:[#allocation8 + $0xd0] sm:$0xff] }
 0x16b   :  { %1915 = vmatmul.mubr.bf16.vlgmr.msra.gmra.mrb[8].mxu0 %v815_v33  ;;  %v959_v33 = vld [vmem:[#allocation8 + $0xf0] sm:$0xff] }
 0x16c   :  { %1397 = vmatpush1.bf16.msra.mxu0 %v1727_v44  ;;  %v978_v44 = vld [vmem:[#allocation8 + $0x188] sm:$0xff]  ;;  %1428 = vmatprep.mubr.bf16.mxu0 %v2167_v3  ;;  %v1753_v47 = vcombine.low %v955_v32, %v959_v33 }
 0x16d   :  { %1398 = vmatprep.subr.bf16.mxu0 %v1736_v34  ;;  %v1776_v54 = vcombine.high %v978_v44, %v982_v52  ;;  %v1775_v55 = vcombine.low %v978_v44, %v982_v52  ;;  %v956_v34 = vld [vmem:[#allocation8 + $0xd8] sm:$0xff] }
 0x16e   :  { %v1756_v40 = vcombine.high %v956_v34, %v960_v35  ;;  %v976_v44 = vld [vmem:[#allocation8 + $0x178] sm:$0xff] }
 0x170   :  { %1399 = vmatpush1.bf16.msra.mxu0 %v1735_v37  ;;  %v1747_v37 = vcombine.low %v948_v25, %v952_v26 }
 0x171   :  { %1400 = vmatprep.subr.bf16.mxu0 %v1744_v39  ;;  %v1754_v39 = vcombine.high %v955_v32, %v959_v33 }
 0x174   :  { %1401 = vmatpush1.bf16.msra.mxu0 %v1743_v43  ;;  %v967_v43 = vld [vmem:[#allocation8 + $0x130] sm:$0xff] }
 0x175   :  { %1402 = vmatprep.subr.bf16.mxu0 %v1752_v45  ;;  %v964_v45 = vld [vmem:[#allocation8 + $0x118] sm:$0xff]  ;;  %v1761_v52 = vcombine.low %v963_v42, %v967_v43 }
 0x176   :  { %v1764_v50 = vcombine.high %v964_v45, %v968_v46 }
 0x178   :  { %1403 = vmatpush1.bf16.msra.mxu0 %v1751_v48  ;;  %v1755_v48 = vcombine.low %v956_v34, %v960_v35 }
 0x179   :  { %1404 = vmatprep.subr.bf16.mxu0 %v1760_v49  ;;  %v1762_v49 = vcombine.high %v963_v42, %v967_v43 }
 0x17c   :  { %1405 = vmatpush1.bf16.msra.mxu0 %v1759_v38  ;;  %v975_v38 = vld [vmem:[#allocation8 + $0x170] sm:$0xff] }
 0x17d   :  { %1406 = vmatprep.subr.bf16.mxu0 %v1768_v41  ;;  %v972_v41 = vld [vmem:[#allocation8 + $0x158] sm:$0xff]  ;;  %v1769_v60 = vcombine.low %v971_v51, %v975_v38 }
 0x17e   :  { %v1771_v61 = vcombine.low %v972_v41, %v976_v44 }
 0x180   :  { %1407 = vmatpush1.bf16.msra.mxu0 %v1767_v53  ;;  %v1763_v53 = vcombine.low %v964_v45, %v968_v46 }
 0x181   :  { %1408 = vmatprep.subr.bf16.mxu0 %v1776_v54  ;;  %v1770_v54 = vcombine.high %v971_v51, %v975_v38  ;;  %v1017_v38 = vsub.s32 5, %v2264_v30 }
 0x184   :  { %1409 = vmatpush1.bf16.msra.mxu0 %v1775_v55  ;;  %v1772_v55 = vcombine.high %v972_v41, %v976_v44  ;;  %v1025_v41 = vsub.s32 7, %v2264_v30 }
 0x185   :  { %1410 = vmatprep.subr.bf16.mxu0 %v1784_v63  ;;  %v1780_v63 = vcombine.high %v980_v58, %v984_v59 }
 0x188   :  { %1411 = vmatpush1.bf16.msra.mxu0 %v1783_v62  ;;  %v1778_v62 = vcombine.high %v979_v56, %v983_v57 }
 0x189   :  { %1478 = vmatprep.subr.bf16.mxu0 %v1732_v8  ;;  %v1785_v8 = vcombine.low %v987_v0, %v991_v1 }
 0x23e   :  { %v921_v10 = vpop.f32.mrb[8].mxu0 }
 0x23f   :  { %v922_v11 = vadd.f32 %v1716_v9, %v921_v10  ;;  %v1916_v12 = vpop.f32.mrb[9].mxu0  ;;  %v997_v10 = vsub.s32 0, %v2264_v30 }
 0x240   :  { %v924_v14 = vpop.f32.mrb[10].mxu0  ;;  %v993_v12 = vld [vmem:[%s2326_s6] sm:$0xff]  ;;  %s2169_s6 = smov [#allocation10]  }
 0x241   :  { %v927_v18 = vmax.f32 %v922_v11, 0.0  ;;  %v1917_v19 = vpop.f32.mrb[11].mxu0  ;;  %v1005_v11 = vsub.s32 2, %v2264_v30  ;;  %v1009_v14 = vsub.s32 3, %v2264_v30  ;;  %v998_v15 = vrot.slane %v993_v12, %v997_v10  ;;  %s1640_s29 = sshll.u32 %s2169_s6, 4  ;;  %s1641_s29 = int_to_ptr.vmem [resolvable:$true] %s1640_s29 }
 0x242   :  { %v1002_v17 = vrot.slane %v993_v12, %v1001_v13  ;;  %v1026_v58 = vrot.slane %v993_v12, %v1025_v41  ;;  %s2126_s30 = scalar_lea.vmem %s1641_s29, 128  ;;  %p2131_p5 = scmp.lt.s32.totalorder %s1641_s29, %s1641_s29 }
 0x243   :  { %v2290_v20 = vpack.c.bf16 %v927_v18, %v927_v18  ;;  %v1006_v16 = vrot.slane %v993_v12, %v1005_v11  ;;  %v1010_v18 = vrot.slane %v993_v12, %v1009_v14  ;;  %p2127_p4 = scmp.ne.s32.totalorder %s1641_s29, %s2126_s30  ;;  %p2132_p6 = scmp.lt.s32.totalorder %s2126_s30, %s2126_s30 }
 0x245   :  { %1388 = vmatmul.mubr.bf16.vlgmr.msra.gmra.mrb[8].mxu1 %v2290_v20  ;;  %1429 = vmatmul.mubr.bf16.vlgmr.msra.gmra.mrb[12].mxu0 %v2290_v20  ;;  %p2133_p7 = por %p2132_p6, %p2131_p5 }
 0x246   :  { %1438 = vmatpush1.bf16.msra.mxu1 %v1729_v4  ;;  %1479 = vmatpush1.bf16.msra.mxu0 %v1731_v7  ;;  %v1777_v4 = vcombine.low %v979_v56, %v983_v57  ;;  %v1018_v57 = vrot.slane %v993_v12, %v1017_v38 }
 0x247   :  { %1439 = vmatprep.subr.bf16.mxu1 %v1738_v21  ;;  %1480 = vmatprep.subr.bf16.mxu0 %v1740_v22  ;;  %p2134_p8 = pnand %p2133_p7, %p2127_p4 }
 0x248   :  { %1469 = vmatprep.mubr.bf16.mxu1 %v2167_v3  ;;  %1510 = vmatprep.mubr.bf16.mxu0 %v2167_v3  ;;  %v992_v3 = vld [vmem:[#allocation8 + $0x1f8] sm:$0xff] }
 0x249   :  { %v1788_v7 = vcombine.high %v988_v2, %v992_v3  ;;  %v1787_v9 = vcombine.low %v988_v2, %v992_v3 }
 0x24a   :  { %1440 = vmatpush1.bf16.msra.mxu1 %v1737_v27  ;;  %1481 = vmatpush1.bf16.msra.mxu0 %v1739_v28 }
 0x24b   :  { %1441 = vmatprep.subr.bf16.mxu1 %v1746_v29  ;;  %1482 = vmatprep.subr.bf16.mxu0 %v1748_v31 }
 0x24e   :  { %1442 = vmatpush1.bf16.msra.mxu1 %v1745_v36  ;;  %1483 = vmatpush1.bf16.msra.mxu0 %v1747_v37 }
 0x24f   :  { %1443 = vmatprep.subr.bf16.mxu1 %v1754_v39  ;;  %1484 = vmatprep.subr.bf16.mxu0 %v1756_v40 }
 0x252   :  { %1444 = vmatpush1.bf16.msra.mxu1 %v1753_v47  ;;  %1485 = vmatpush1.bf16.msra.mxu0 %v1755_v48  ;;  %v2168_v47 = vmov 1966171168  }
 0x253   :  { %1445 = vmatprep.subr.bf16.mxu1 %v1762_v49  ;;  %1486 = vmatprep.subr.bf16.mxu0 %v1764_v50  ;;  %v1588_v48 = vunpack.c.l.s4 %v2168_v47  ;;  %v1013_v49 = vsub.s32 4, %v2264_v30  ;;  %v1021_v50 = vsub.s32 6, %v2264_v30 }
 0x255   :  { %v1589_v51 = vunpack.c.0.s8 %v1588_v48 }
 0x256   :  { %1446 = vmatpush1.bf16.msra.mxu1 %v1761_v52  ;;  %1487 = vmatpush1.bf16.msra.mxu0 %v1763_v53  ;;  %v1014_v53 = vrot.slane %v993_v12, %v1013_v49 }
 0x257   :  { %1447 = vmatprep.subr.bf16.mxu1 %v1770_v54  ;;  %1488 = vmatprep.subr.bf16.mxu0 %v1772_v55  ;;  %v1022_v54 = vrot.slane %v993_v12, %v1021_v50  ;;  %v1592_v55 = vsub.s32 %v1589_v51, %v2264_v30 }
 0x25a   :  { %1448 = vmatpush1.bf16.msra.mxu1 %v1769_v60  ;;  %1489 = vmatpush1.bf16.msra.mxu0 %v1771_v61 }
 0x25b   :  { %1449 = vmatprep.subr.bf16.mxu1 %v1778_v62  ;;  %1490 = vmatprep.subr.bf16.mxu0 %v1780_v63 }
 0x25e   :  { %1450 = vmatpush1.bf16.msra.mxu1 %v1777_v4  ;;  %1491 = vmatpush1.bf16.msra.mxu0 %v1779_v5 }
 0x25f   :  { %1451 = vmatprep.subr.bf16.mxu1 %v1786_v6  ;;  %1492 = vmatprep.subr.bf16.mxu0 %v1788_v7 }
 0x262   :  { %1452 = vmatpush1.bf16.msra.mxu1 %v1785_v8  ;;  %1493 = vmatpush1.bf16.msra.mxu0 %v1787_v9 }
 0x265   :  { %1470 = vmatmul.mubr.bf16.vlgmr.msra.gmra.mrb[12].mxu1 %v2290_v20  ;;  %1511 = vmatmul.mubr.bf16.vlgmr.msra.gmra.mrb[16].mxu0 %v2290_v20 }
 0x318   :  { %v1389_v19 = vpop.f32.mrb[8].mxu1  ;;  %v1430_v21 = vpop.f32.mrb[12].mxu0 }
 0x319   :  { %v1390_v22 = vadd.f32 %v1389_v19, %v998_v15  ;;  %v1431_v20 = vadd.f32 %v1430_v21, %v1006_v16  ;;  %v1391_v23 = vpop.f32.mrb[9].mxu1  ;;  %v1432_v24 = vpop.f32.mrb[13].mxu0 }
 0x31a   :  { %v1392_v25 = vadd.f32 %v1391_v23, %v1002_v17  ;;  %v1433_v26 = vadd.f32 %v1432_v24, %v1010_v18  ;;  %v1393_v27 = vpop.f32.mrb[10].mxu1  ;;  %v1434_v28 = vpop.f32.mrb[14].mxu0 }
 0x31b   :  { %v1789_v29 = vmul.f32 -1.442695, %v1390_v22  ;;  %v1791_v31 = vmul.f32 -1.442695, %v1431_v20  ;;  %v1394_v32 = vpop.f32.mrb[11].mxu1  ;;  %v1435_v33 = vpop.f32.mrb[15].mxu0 }
 0x31c   :  { %v1790_v34 = vmul.f32 -1.442695, %v1392_v25  ;;  %v1792_v35 = vmul.f32 -1.442695, %v1433_v26 }
 0x31d   :  { %2006 = vpow2.f32 %v1789_v29 }
 0x31e   :  { %2008 = vpow2.f32 %v1791_v31 }
 0x31f   :  { %2010 = vpow2.f32 %v1790_v34 }
 0x320   :  { %2012 = vpow2.f32 %v1792_v35 }
 0x327   :  { %v2007_v36 = vpop.eup %2006 }
 0x328   :  { %v2009_v37 = vpop.eup %2008  ;;  %v1543_v39 = vadd.f32 1.0, %v2007_v36 }
 0x329   :  { %v2011_v40 = vpop.eup %2010  ;;  %v1545_v42 = vadd.f32 1.0, %v2009_v37 }
 0x32a   :  { %v2013_v43 = vpop.eup %2012  ;;  %2014 = vrcp.f32 %v1543_v39  ;;  %v1544_v45 = vadd.f32 1.0, %v2011_v40 }
 0x32b   :  { %2016 = vrcp.f32 %v1545_v42  ;;  %v1546_v46 = vadd.f32 1.0, %v2013_v43 }
 0x32c   :  { %2018 = vrcp.f32 %v1544_v45 }
 0x32d   :  { %2020 = vrcp.f32 %v1546_v46 }
 0x334   :  { %v2015_v44 = vpop.eup %2014 }
 0x335   :  { %v2017_v52 = vpop.eup %2016 }
 0x336   :  { %v2019_v56 = vpop.eup %2018 }
 0x337   :  { %v2021_v59 = vpop.eup %2020  ;;  %v1797_v60 = vpack.c.bf16 %v2019_v56, %v2015_v44 }
 0x338   :  { %v1471_v61 = vpop.f32.mrb[12].mxu1  ;;  %v1512_v62 = vpop.f32.mrb[16].mxu0  ;;  %v1798_v63 = vpack.c.bf16 %v2021_v59, %v2017_v52 }
 0x339   :  { %v1472_v0 = vadd.f32 %v1471_v61, %v1014_v53  ;;  %v1513_v1 = vadd.f32 %v1512_v62, %v1022_v54  ;;  %v1473_v2 = vpop.f32.mrb[13].mxu1  ;;  %v1514_v3 = vpop.f32.mrb[17].mxu0  ;;  %v1593_v4 = vrot.slane %v1797_v60, %v1592_v55 }
 0x33a   :  { %v1474_v5 = vadd.f32 %v1473_v2, %v1018_v57  ;;  %v1515_v6 = vadd.f32 %v1514_v3, %v1026_v58  ;;  %v1475_v7 = vpop.f32.mrb[14].mxu1  ;;  %v1516_v8 = vpop.f32.mrb[18].mxu0  ;;  %v1600_v9 = vrot.slane %v1798_v63, %v1592_v55 }
 0x33b   :  { %v1793_v10 = vmul.f32 -1.442695, %v1472_v0  ;;  %v1795_v30 = vmul.f32 -1.442695, %v1513_v1  ;;  %v1476_v11 = vpop.f32.mrb[15].mxu1  ;;  %v1517_v13 = vpop.f32.mrb[19].mxu0 }
 0x33c   :  { %v1794_v12 = vmul.f32 -1.442695, %v1474_v5  ;;  %v1796_v14 = vmul.f32 -1.442695, %v1515_v6  ;;  %v1615_v15 = vcombine.low %v1593_v4, %v1600_v9 }
 0x33d   :  { %2022 = vpow2.f32 %v1793_v10 }
 0x33e   :  { %2024 = vpow2.f32 %v1795_v30  ;;  %v1623_v34 = vrot.slane %v1615_v15, %v1592_v55 }
 0x33f   :  { %2026 = vpow2.f32 %v1794_v12 }
 0x340   :  { %2028 = vpow2.f32 %v1796_v14 }
 0x347   :  { %v2023_v16 = vpop.eup %2022 }
 0x348   :  { %v2025_v17 = vpop.eup %2024  ;;  %v1547_v18 = vadd.f32 1.0, %v2023_v16 }
 0x349   :  { %v2027_v19 = vpop.eup %2026  ;;  %v1549_v21 = vadd.f32 1.0, %v2025_v17 }
 0x34a   :  { %v2029_v22 = vpop.eup %2028  ;;  %2030 = vrcp.f32 %v1547_v18  ;;  %v1548_v20 = vadd.f32 1.0, %v2027_v19 }
 0x34b   :  { %2032 = vrcp.f32 %v1549_v21  ;;  %v1550_v23 = vadd.f32 1.0, %v2029_v22 }
 0x34c   :  { %2034 = vrcp.f32 %v1548_v20 }
 0x34d   :  { %2036 = vrcp.f32 %v1550_v23 }
 0x354   :  { %v2031_v24 = vpop.eup %2030 }
 0x355   :  { %v2033_v25 = vpop.eup %2032 }
 0x356   :  { %v2035_v26 = vpop.eup %2034 }
 0x357   :  { %v2037_v27 = vpop.eup %2036  ;;  %v1799_v28 = vpack.c.bf16 %v2035_v26, %v2031_v24 }
 0x358   :  { %v1800_v29 = vpack.c.bf16 %v2037_v27, %v2033_v25 }
 0x359   :  { %v1607_v31 = vrot.slane %v1799_v28, %v1592_v55 }
 0x35a   :  { %v1614_v32 = vrot.slane %v1800_v29, %v1592_v55 }
 0x35c   :  { %v1616_v33 = vcombine.low %v1607_v31, %v1614_v32 }
 0x35e   :  { %v1630_v35 = vrot.slane %v1616_v33, %v1592_v55 }
 0x360   :  { %v1631_v36 = vcombine.low %v1623_v34, %v1630_v35 }
 0x362   :  { %1633 = vst [vmem:[#allocation10] sm:$0xff] %v1631_v36 }
 0x363   :  { %2137 = shalt.err (!%p2134_p8)
}
 0x364   :  { %s2138_s10 = scalar_lea.hbm %s2327_s7, 128 }
 0x365   :  { %p2139_p9 = scmp.ne.s32.totalorder %s2327_s7, %s2138_s10  ;;  %p2142_p10 = scmp.lt.u32.totalorder %s2138_s10, %s2327_s7 }
 0x367   :  { %p2144_p11 = pnand %p2142_p10, %p2139_p9 }
 0x369   :  { %2147 = shalt.err (!%p2144_p11)
}
 0x36a   :  { %1643 = dma.vmem_to_hbm [thread:$0]  %s1641_s29, 128, %s2327_s7, [#allocation4]  }
 0x36b   :  { %2154 = dma.done.wait [#allocation4], 128  }
 0x36c   :  { %2155 = vsyncadd [#allocation4], 4294967168 }
 0x36d   :  { %1647 = vsyncpa [#allocation3], 1 }
 0x36e   :  { %1648 = vsyncpa [#allocation6], 1 }
 0x36f   :  { %1649 = vsyncpa [#allocation9], 1 }
 0x370   :  { %1650 = vsyncpa [#allocation4], 1 }

</bundles_post_ra>
